<compile_context>
chip_gen: v5e
topology: v5e:2x2
jax: 0.10.0
libtpu: 0.0.40
codegen_flags: <defaults>
</compile_context>

<pallas_src>
import math

import numpy as np

import jax
import jax.numpy as jnp
from jax.experimental import pallas as pl
from jax.experimental.pallas import tpu as pltpu

SEQ_LEN = 150  # hard-coded by the module's MaxPool kernel size


def _round_up(n, m):
    return ((n + m - 1) // m) * m


def _fused_cnn_kernel(x_ref, w_ref, b_ref, m_ref, o_ref):
    # x_ref: (bt, l_pad, D) f32        w_ref: (w_max, D, F_total) f32 (zero rows for
    # b_ref: (1, F_total)  f32                 offsets a shorter window doesn't use)
    # m_ref: (T, F_total)  f32 pool mask (0 valid / -inf invalid)
    # o_ref: (1, bt, F_total) f32
    bt, _, d = x_ref.shape
    w_max = w_ref.shape[0]
    t_cols, f_total = m_ref.shape

    x = x_ref[...]                                        # (bt, l_pad, D) f32

    # Convolution of every window branch: accumulate w_max matmuls, one per row
    # offset.  T is a multiple of 8 so the flatten is layout-preserving.
    acc = None
    for i in range(w_max):
        xi = x[:, i:i + t_cols, :].reshape(bt * t_cols, d)
        ci = jnp.dot(xi, w_ref[i], preferred_element_type=jnp.float32)
        acc = ci if acc is None else acc + ci
    conv = acc.reshape(bt, t_cols, f_total)               # (bt, T, F_total) f32

    # Single masked max-pool over positions; mask excludes positions past each
    # branch's valid length (and the zero-padding rows).  Bias after the max.
    pooled = jnp.max(conv + m_ref[...][None, :, :], axis=1)        # (bt, F_total)
    o_ref[...] = (pooled + b_ref[...])[None, :, :].astype(o_ref.dtype)


def _pick_batch_block(batch, requested):
    """Largest divisor of `batch` <= requested (clamped to 64 for v7x VMEM),
    preferring a choice that keeps the grid >= 2 so both v7x TensorCores work."""
    requested = max(1, min(int(requested), 64, batch))
    divisors = [d for d in range(1, batch + 1) if batch % d == 0 and d <= requested]
    bt = max(divisors)
    if batch // bt < 2:
        multi = [d for d in divisors if batch // d >= 2]
        if multi:
            bt = max(multi)
    return bt


def cnn_layers_forward(x_nchw, params, *, batch_block=32):
    """Full CNNLayers.forward (inference).

    x_nchw: (B, 1, 150, d_w) float32
    params: list of (conv_weight (F, 1, w, d_w), bias (F,), window_size)
    returns (B, F * len(params)) float32, matching torch.cat of the branch outputs.
    """
    B, C, L, D = x_nchw.shape
    assert C == 1
    assert L == SEQ_LEN, "CNNLayers hard-codes seq_len=150 via its MaxPool kernel"

    window_sizes = [p[2] for p in params]
    num_filter = params[0][0].shape[0]
    f_total = num_filter * len(window_sizes)
    w_max = max(window_sizes)
    w_min = min(window_sizes)

    # 8-aligned conv-position count and padded sequence length (keeps every
    # in-kernel reshape tile-aligned; extra rows are zero and masked out).
    t_cols = _round_up(L - w_min + 1, 8)                 # 152 for seq_len=150
    l_pad = _round_up(t_cols + w_max - 1, 8)             # 160

    # Pack every branch's conv weight into one (w_max, D, F_total) tensor: slot i
    # holds weight[f, 0, i, :]; offsets a shorter window doesn't use are zero, so
    # they contribute nothing to that branch's columns.  Columns are F-major per
    # window => the kernel writes the final concatenated layout directly.
    cols = []
    for (w, b, ws) in params:
        w_kf = jnp.transpose(w[:, 0, :, :], (1, 2, 0))            # (ws, D, F)
        w_kf = jnp.pad(w_kf, ((0, w_max - ws), (0, 0), (0, 0)))   # (w_max, D, F)
        cols.append(w_kf)
    w_packed = jnp.concatenate(cols, axis=2).astype(jnp.float32)  # (w_max, D, F_total)
    bias = jnp.concatenate([p[1] for p in params]).reshape(1, f_total).astype(jnp.float32)

    # Additive pool mask: position t is valid for window ws iff t < L - ws + 1.
    mask_np = np.zeros((t_cols, f_total), np.float32)
    for idx, ws in enumerate(window_sizes):
        t_valid = L - ws + 1
        mask_np[t_valid:, idx * num_filter:(idx + 1) * num_filter] = -np.inf
    pool_mask = jnp.asarray(mask_np)

    x = x_nchw[:, 0, :, :].astype(jnp.float32)                     # (B, L, D)
    x = jnp.pad(x, ((0, 0), (0, l_pad - L), (0, 0)))               # (B, l_pad, D)

    bt = _pick_batch_block(B, batch_block)
    nb = B // bt

    flops = 2 * B * t_cols * w_max * D * f_total
    bytes_accessed = 4 * (B * l_pad * D + w_max * D * f_total
                          + t_cols * f_total + f_total + B * f_total)

    out = pl.pallas_call(
        _fused_cnn_kernel,
        out_shape=jax.ShapeDtypeStruct((nb, bt, f_total), jnp.float32),
        grid=(nb,),
        in_specs=[
            pl.BlockSpec((bt, l_pad, D), lambda i: (i, 0, 0)),            # activations
            pl.BlockSpec((w_max, D, f_total), lambda i: (0, 0, 0)),       # packed weights (resident)
            pl.BlockSpec((1, f_total), lambda i: (0, 0)),                 # bias (resident)
            pl.BlockSpec((t_cols, f_total), lambda i: (0, 0)),            # pool mask (resident)
        ],
        out_specs=pl.BlockSpec((1, bt, f_total), lambda i: (i, 0, 0)),
        compiler_params=pltpu.CompilerParams(
            dimension_semantics=("parallel",),        # lets v7x use both TensorCores
            vmem_limit_bytes=32 * 1024 * 1024,        # headroom for batch_block up to 64
        ),
        cost_estimate=pl.CostEstimate(
            flops=flops, transcendentals=0, bytes_accessed=bytes_accessed),
    )(x, w_packed, bias, pool_mask)

    return out.reshape(B, f_total)


def xavier_uniform_conv(key, num_filter, window_size, d_w):
    # nn.init.xavier_uniform_ for Conv2d(1, F, (w, d_w)):
    # fan_in = 1*w*d_w, fan_out = F*w*d_w; bias -> zeros.
    fan_in = 1 * window_size * d_w
    fan_out = num_filter * window_size * d_w
    bound = math.sqrt(6.0 / (fan_in + fan_out))
    w = jax.random.uniform(
        key, (num_filter, 1, window_size, d_w),
        minval=-bound, maxval=bound, dtype=jnp.float32)
    b = jnp.zeros((num_filter,), jnp.float32)
    return w, b


def _reference_forward(x_nchw, params):
    # Pure-JAX f32 reference (same math as the PyTorch module, no Pallas).
    B = x_nchw.shape[0]
    x = x_nchw[:, 0, :, :]                       # (B, L, D)
    L = x.shape[1]
    outs = []
    for (w, b, ws) in params:
        F = w.shape[0]
        T = L - ws + 1
        acc = jnp.zeros((B, T, F), jnp.float32)
        for i in range(ws):
            acc = acc + jnp.einsum("btd,fd->btf", x[:, i:i + T, :], w[:, 0, i, :])
        acc = acc + b[None, None, :]
        outs.append(jnp.max(acc, axis=1))        # pool kernel == T when L == 150
    return jnp.concatenate(outs, axis=1)


if __name__ == "__main__":
    # Small shapes consistent with the module; seq_len is fixed to 150 by the
    # module's hard-coded MaxPool kernel.
    B = 2
    d_w = 32
    num_filter = 8
    window_sizes = [2, 3, 4]
    dropout_p = 0.5          # identity at inference; not applied
    L = SEQ_LEN

    key = jax.random.PRNGKey(0)
    key_x, *key_ws = jax.random.split(key, 1 + len(window_sizes))

    params = []
    for ws, kw in zip(window_sizes, key_ws):
        w, b = xavier_uniform_conv(kw, num_filter, ws, d_w)
        params.append((w, b, ws))

    x = jax.random.normal(key_x, (B, 1, L, d_w), dtype=jnp.float32)

    out = jax.block_until_ready(cnn_layers_forward(x, params))
    ref = jax.block_until_ready(_reference_forward(x, params))

    assert out.shape == (B, num_filter * len(window_sizes)), out.shape
    max_err = float(jnp.max(jnp.abs(out - ref)))
    assert jnp.allclose(out, ref, atol=2e-2, rtol=2e-2), f"mismatch vs reference: {max_err}"

    print("KERNEL_OK")
</pallas_src>

<mosaic_0001>
module attributes {stable_mosaic.version = 11 : i64} {
  func.func @_fused_cnn_kernel(%arg0: i32, %arg1: memref<1x160x32xf32, #tpu.memory_space<vmem>>, %arg2: memref<4x32x24xf32, #tpu.memory_space<vmem>>, %arg3: memref<1x24xf32, #tpu.memory_space<vmem>>, %arg4: memref<152x24xf32, #tpu.memory_space<vmem>>, %arg5: memref<1x1x24xf32, #tpu.memory_space<vmem>>) attributes {dimension_semantics = [#tpu.dimension_semantics<parallel>], iteration_bounds = array<i64: 2>, scalar_prefetch = 0 : i64, scratch_operands = 0 : i64, tpu.core_type = #tpu.core_type<tc>, window_params = [{transform_indices = @transform_0, window_bounds = array<i64: 1, 160, 32>}, {pipeline_mode = #tpu.pipeline_mode<synchronous>, transform_indices = @transform_1, window_bounds = array<i64: 4, 32, 24>}, {pipeline_mode = #tpu.pipeline_mode<synchronous>, transform_indices = @transform_2, window_bounds = array<i64: 1, 24>}, {pipeline_mode = #tpu.pipeline_mode<synchronous>, transform_indices = @transform_3, window_bounds = array<i64: 152, 24>}, {transform_indices = @transform_4, window_bounds = array<i64: 1, 1, 24>}]} {
    %c0 = arith.constant 0 : index
    %c0_0 = arith.constant 0 : index
    %c0_1 = arith.constant 0 : index
    %0 = vector.load %arg1[%c0, %c0_0, %c0_1] : memref<1x160x32xf32, #tpu.memory_space<vmem>>, vector<1x160x32xf32>
    %1 = vector.extract_strided_slice %0 {offsets = [0, 0, 0], sizes = [1, 152, 32], strides = [1, 1, 1]} : vector<1x160x32xf32> to vector<1x152x32xf32>
    %2 = vector.shape_cast %1 : vector<1x152x32xf32> to vector<152x32xf32>
    %c0_2 = arith.constant 0 : index
    %c0_3 = arith.constant 0 : index
    %c0_4 = arith.constant 0 : index
    %3 = vector.load %arg2[%c0_2, %c0_3, %c0_4] : memref<4x32x24xf32, #tpu.memory_space<vmem>>, vector<1x32x24xf32>
    %4 = vector.shape_cast %3 : vector<1x32x24xf32> to vector<32x24xf32>
    %cst = arith.constant dense<0.000000e+00> : vector<152x24xf32>
    %5 = tpu.matmul %2, %4, %cst {dimension_numbers = #tpu.dot_dimension_numbers<[1], [0], [0], [1], [0, 0, 1, 1], [], []>} : vector<152x32xf32>, vector<32x24xf32>, vector<152x24xf32> -> vector<152x24xf32>
    %6 = vector.extract_strided_slice %0 {offsets = [0, 1, 0], sizes = [1, 152, 32], strides = [1, 1, 1]} : vector<1x160x32xf32> to vector<1x152x32xf32>
    %7 = vector.shape_cast %6 : vector<1x152x32xf32> to vector<152x32xf32>
    %c1 = arith.constant 1 : index
    %c0_5 = arith.constant 0 : index
    %c0_6 = arith.constant 0 : index
    %8 = vector.load %arg2[%c1, %c0_5, %c0_6] : memref<4x32x24xf32, #tpu.memory_space<vmem>>, vector<1x32x24xf32>
    %9 = vector.shape_cast %8 : vector<1x32x24xf32> to vector<32x24xf32>
    %cst_7 = arith.constant dense<0.000000e+00> : vector<152x24xf32>
    %10 = tpu.matmul %7, %9, %cst_7 {dimension_numbers = #tpu.dot_dimension_numbers<[1], [0], [0], [1], [0, 0, 1, 1], [], []>} : vector<152x32xf32>, vector<32x24xf32>, vector<152x24xf32> -> vector<152x24xf32>
    %11 = arith.addf %5, %10 : vector<152x24xf32>
    %12 = vector.extract_strided_slice %0 {offsets = [0, 2, 0], sizes = [1, 152, 32], strides = [1, 1, 1]} : vector<1x160x32xf32> to vector<1x152x32xf32>
    %13 = vector.shape_cast %12 : vector<1x152x32xf32> to vector<152x32xf32>
    %c2 = arith.constant 2 : index
    %c0_8 = arith.constant 0 : index
    %c0_9 = arith.constant 0 : index
    %14 = vector.load %arg2[%c2, %c0_8, %c0_9] : memref<4x32x24xf32, #tpu.memory_space<vmem>>, vector<1x32x24xf32>
    %15 = vector.shape_cast %14 : vector<1x32x24xf32> to vector<32x24xf32>
    %cst_10 = arith.constant dense<0.000000e+00> : vector<152x24xf32>
    %16 = tpu.matmul %13, %15, %cst_10 {dimension_numbers = #tpu.dot_dimension_numbers<[1], [0], [0], [1], [0, 0, 1, 1], [], []>} : vector<152x32xf32>, vector<32x24xf32>, vector<152x24xf32> -> vector<152x24xf32>
    %17 = arith.addf %11, %16 : vector<152x24xf32>
    %18 = vector.extract_strided_slice %0 {offsets = [0, 3, 0], sizes = [1, 152, 32], strides = [1, 1, 1]} : vector<1x160x32xf32> to vector<1x152x32xf32>
    %19 = vector.shape_cast %18 : vector<1x152x32xf32> to vector<152x32xf32>
    %c3 = arith.constant 3 : index
    %c0_11 = arith.constant 0 : index
    %c0_12 = arith.constant 0 : index
    %20 = vector.load %arg2[%c3, %c0_11, %c0_12] : memref<4x32x24xf32, #tpu.memory_space<vmem>>, vector<1x32x24xf32>
    %21 = vector.shape_cast %20 : vector<1x32x24xf32> to vector<32x24xf32>
    %cst_13 = arith.constant dense<0.000000e+00> : vector<152x24xf32>
    %22 = tpu.matmul %19, %21, %cst_13 {dimension_numbers = #tpu.dot_dimension_numbers<[1], [0], [0], [1], [0, 0, 1, 1], [], []>} : vector<152x32xf32>, vector<32x24xf32>, vector<152x24xf32> -> vector<152x24xf32>
    %23 = arith.addf %17, %22 : vector<152x24xf32>
    %24 = vector.shape_cast %23 : vector<152x24xf32> to vector<1x152x24xf32>
    %c0_14 = arith.constant 0 : index
    %c0_15 = arith.constant 0 : index
    %25 = vector.load %arg4[%c0_14, %c0_15] : memref<152x24xf32, #tpu.memory_space<vmem>>, vector<152x24xf32>
    %26 = vector.shape_cast %25 : vector<152x24xf32> to vector<1x152x24xf32>
    %27 = arith.addf %24, %26 : vector<1x152x24xf32>
    %cst_16 = arith.constant dense<0xFF800000> : vector<1x24xf32>
    %28 = vector.multi_reduction <maximumf>, %27, %cst_16 [1] : vector<1x152x24xf32> to vector<1x24xf32>
    %c0_17 = arith.constant 0 : index
    %c0_18 = arith.constant 0 : index
    %29 = vector.load %arg3[%c0_17, %c0_18] : memref<1x24xf32, #tpu.memory_space<vmem>>, vector<1x24xf32>
    %30 = arith.addf %28, %29 : vector<1x24xf32>
    %31 = vector.shape_cast %30 : vector<1x24xf32> to vector<1x1x24xf32>
    %c0_19 = arith.constant 0 : index
    %c0_20 = arith.constant 0 : index
    %c0_21 = arith.constant 0 : index
    %32 = vector.load %arg5[%c0_19, %c0_20, %c0_21] : memref<1x1x24xf32, #tpu.memory_space<vmem>>, vector<1x1x24xf32>
    tpu.vector_store %arg5[%c0_19, %c0_20, %c0_21], %31 {strides = array<i32>} : memref<1x1x24xf32, #tpu.memory_space<vmem>>, vector<1x1x24xf32>,
    return
  }
  func.func @transform_0(%arg0: i32) -> (i32, i32, i32) {
    %c0_i32 = arith.constant 0 : i32
    %c0_i32_0 = arith.constant 0 : i32
    %c0_i32_1 = arith.constant 0 : i32
    return %arg0, %c0_i32, %c0_i32_0 : i32, i32, i32
  }
  func.func @transform_1(%arg0: i32) -> (i32, i32, i32) {
    %c0_i32 = arith.constant 0 : i32
    %c0_i32_0 = arith.constant 0 : i32
    %c0_i32_1 = arith.constant 0 : i32
    %c0_i32_2 = arith.constant 0 : i32
    return %c0_i32, %c0_i32_0, %c0_i32_1 : i32, i32, i32
  }
  func.func @transform_2(%arg0: i32) -> (i32, i32) {
    %c0_i32 = arith.constant 0 : i32
    %c0_i32_0 = arith.constant 0 : i32
    %c0_i32_1 = arith.constant 0 : i32
    return %c0_i32, %c0_i32_0 : i32, i32
  }
  func.func @transform_3(%arg0: i32) -> (i32, i32) {
    %c0_i32 = arith.constant 0 : i32
    %c0_i32_0 = arith.constant 0 : i32
    %c0_i32_1 = arith.constant 0 : i32
    return %c0_i32, %c0_i32_0 : i32, i32
  }
  func.func @transform_4(%arg0: i32) -> (i32, i32, i32) {
    %c0_i32 = arith.constant 0 : i32
    %c0_i32_0 = arith.constant 0 : i32
    %c0_i32_1 = arith.constant 0 : i32
    return %arg0, %c0_i32, %c0_i32_0 : i32, i32, i32
  }
}

</mosaic_0001>

<bundles_post_ra>
// kernel: tpu_custom_call.1
= control target key start
LH: loop header
LB: loop body
LE: loop exit
PB: predicated region body
PF: predicated region fallthrough
CT: control target
= control target key end

     0   :  { %9 = vsyncpa [#allocation3], 0  ;;  %s1630_s0 = inlined_call_operand.vmem [shape: f32[2,160,32], index: 0, kind: input, shape index: {}]   ;;  %s1631_s1 = inlined_call_operand.vmem [shape: f32[4,32,24], index: 1, kind: input, shape index: {}]   ;;  %s1632_s2 = inlined_call_operand.vmem [shape: f32[1,24], index: 2, kind: input, shape index: {}]   ;;  %s1633_s3 = inlined_call_operand.vmem [shape: f32[152,24], index: 3, kind: input, shape index: {}]   ;;  %s1634_s4 = inlined_call_operand.hbm [shape: f32[2,1,24], index: 4, kind: output, shape index: {}]  }
   0x1   :  { %11 = vsyncpa [#allocation3 + $0x1], 0  ;;  %s1239_s15 = smov 0   ;;  %s1241_s16 = smov 0  }
   0x2   :  { %s1243_s17 = smov 0   ;;  %s1245_s18 = smov 0  }
   0x3 LB: > { %s1260_s19 = sadd.s32 4294967295, %s1212_s18   ;;  %s1015_s20 = sadd.s32 4294967294, %s1212_s18   ;;  %s1212_s18 = sphi %s1245_s18, %s1640_s18   ;;  %s1208_s17 = sphi %s1243_s17, %s1639_s17   ;;  %s1204_s16 = sphi %s1241_s16, %s1638_s16   ;;  %s1200_s15 = sphi %s1239_s15, %s1637_s15  }
   0x4   : > { %s1264_s21 = sadd.s32 1, %s1212_s18   ;;  %s113_s22 = sadd.s32 1, %s1208_s17 }
   0x5   : > { %s110_s23 = ssub.s32 %s1212_s18, %s1264_s21  ;;  %p123_p0 = scmp.ne.s32.totalorder %s1208_s17, %s1204_s16 }
   0x6   : > { %p111_p1 = scmp.eq.s32.totalorder %s110_s23, 0  ;;  %p124_p2 = scmp.eq.s32.totalorder %s1260_s19, 1 }
   0x7   : > { %p129_p3 = scmp.ne.s32.totalorder %s1204_s16, %s1200_s15  ;;  %p130_p4 = scmp.eq.s32.totalorder %s1015_s20, 1 }
   0x8   : > { %s1275_s24 = scalar_select %p111_p1, %s1208_s17, %s113_s22  }
   0x9   : > { %p1277_p5 = por %p124_p2, %p123_p0  ;;  %p1281_p6 = por %p130_p4, %p129_p3 }
   0xa   : > { %p1018_p7 = scmp.ge.s32.totalorder %s1212_s18, 1  ;;  %p165_p8 = scmp.lt.s32.totalorder %s1212_s18, 3 }
   0xc   : > { %p166_p9 = pnand %p1018_p7, %p165_p8 }
   0xd   : > { %p190_p10 = scmp.lt.s32.totalorder (!%p166_p9), %s1260_s19, 1  ;;  %s188_s8 = sand.u32 (!%p166_p9), 1, %s1204_s16  }
   0xe   : > { %169 = sbr.rel (%p166_p9) target bundleno = 336 (0x150), region = 36  ;;  %s956_s11 = scalar_lea.hbm (!%p166_p9), %s1634_s4, %s1260_s19 }
   0xf   : > { %s189_s14 = scalar_lea.vmem (!%p166_p9), [#allocation2], %s188_s8  ;;  %s960_s22 = sshll.u32 (!%p166_p9), %s956_s11, 4  ;;  %s961_s22 = int_to_ptr.hbm [resolvable:$true] %s960_s22 }
  0x10   : > { %s958_s20 = sshll.u32 (!%p166_p9), %s189_s14, 4  ;;  %s948_s23 = scalar_lea.sflag (!%p166_p9), [#allocation3], %s188_s8  ;;  %s959_s20 = int_to_ptr.vmem [resolvable:$true] %s958_s20 }
  0x11   : > { %s1164_s27 = sshra.s32 (!%p166_p9), %s961_s22, 4  ;;  %s1170_s30 = scalar_lea.hbm (!%p166_p9), %s1634_s4, 2  ;;  %s1165_s27 = int_to_ptr.hbm [resolvable:$true] %s1164_s27 }
  0x12   : > { %p1171_p0 = scmp.lt.s32.totalorder (!%p166_p9), %s1165_s27, %s1634_s4 }
  0x13   : > { %v1065_v0 = vld [vmem:[%s1631_s1 + $0x58] sm:$0xff]  ;;  %v1064_v1 = vld [vmem:[%s1631_s1 + $0x50] sm:$0xff]  ;;  %v1063_v5 = vld [vmem:[%s1631_s1 + $0x48] sm:$0xff]  ;;  %s191_s28 = scalar_select %p190_p10, %s1260_s19, 1  ;;  %vm284_vm0 = vcmask 261120   ;;  %vm514_vm1 = vcmask 1045504  }
  0x14   : > { %v1088_v2 = vld [vmem:[%s1631_s1 + $0x78] sm:$0xff]  ;;  %604 = vmatpush.msra.mxu2 %v1065_v0  ;;  %v1087_v6 = vld [vmem:[%s1631_s1 + $0x70] sm:$0xff]  ;;  %v1086_v9 = vld [vmem:[%s1631_s1 + $0x68] sm:$0xff]  ;;  %vm690_vm2 = vcmask 1044480   ;;  %vm244_vm3 = vcmask 1046528   ;;  %vm899_vm4 = vcmask 195584  }
  0x15   : > { %780 = vmatpush.msra.mxu3 %v1088_v2  ;;  %v1023_v3 = vld [vmem:[%s1631_s1 + $0x38] sm:$0xff]  ;;  %v1022_v7 = vld [vmem:[%s1631_s1 + $0x30] sm:$0xff]  ;;  %v1021_v10 = vld [vmem:[%s1631_s1 + $0x28] sm:$0xff]  ;;  %s1110_s9 = smul.u32 160, %s191_s28  ;;  %vm945_vm5 = vcmask 188416   ;;  %s1166_s28 = scalar_lea.hbm %s1165_s27, 1 }
  0x16   : > { %v218_v4 = vld [vmem:[%s1631_s1 + $0x18] sm:$0xff]  ;;  %335 = vmatpush.msra.mxu0 %v1023_v3  ;;  %v217_v8 = vld [vmem:[%s1631_s1 + $0x10] sm:$0xff]  ;;  %605 = vmatpush.msra.mxu2 %v1064_v1  ;;  %v1062_v11 = vld [vmem:[%s1631_s1 + $0x40] sm:$0xff]  ;;  %p1167_p11 = scmp.ne.s32.totalorder %s1165_s27, %s1166_s28  ;;  %p1172_p1 = scmp.lt.s32.totalorder %s1170_s30, %s1166_s28 }
  0x17   : > { %447 = vmatpush.msra.mxu1 %v218_v4  ;;  %781 = vmatpush.msra.mxu3 %v1087_v6  ;;  %v216_v12 = vld [vmem:[%s1631_s1 + $0x8] sm:$0xff]  ;;  %v1085_v13 = vld [vmem:[%s1631_s1 + $0x60] sm:$0xff]  ;;  %s1340_s29 = scalar_lea.vmem %s1630_s0, %s1110_s9 }
  0x18   : > { %336 = vmatpush.msra.mxu0 %v1022_v7  ;;  %606 = vmatpush.msra.mxu2 %v1063_v5  ;;  %v1020_v14 = vld [vmem:[%s1631_s1 + $0x20] sm:$0xff]  ;;  %v196_v17 = vld [vmem:[%s1340_s29 + $0x8] sm:$0xff]  ;;  %v197_v24 = vld [vmem:[%s1340_s29 + $0x10] sm:$0xff]  ;;  %p1168_p12 = pnand %p1167_p11, %p1277_p5  ;;  %p1173_p2 = por %p1172_p1, %p1171_p0 }
  0x19   : > { %448 = vmatpush.msra.mxu1 %v217_v8  ;;  %782 = vmatpush.msra.mxu3 %v1086_v9  ;;  %v215_v15 = vld [vmem:[%s1631_s1] sm:$0xff]  ;;  %v516_v19 = vrot.slane %v196_v17, 2  ;;  %v692_v21 = vrot.slane %v196_v17, 3  ;;  %v246_v23 = vrot.slane %v196_v17, 1  ;;  %v518_v28 = vrot.slane %v197_v24, 2  ;;  %v198_v34 = vld [vmem:[%s1340_s29 + $0x18] sm:$0xff] }
  0x1a   : > { %337 = vmatpush.msra.mxu0 %v1021_v10  ;;  %607 = vmatpush.msra.mxu2 %v1062_v11  ;;  %v195_v16 = vld [vmem:[%s1340_s29] sm:$0xff]  ;;  %v694_v29 = vrot.slane %v197_v24, 3  ;;  %v248_v30 = vrot.slane %v197_v24, 1  ;;  %v520_v35 = vrot.slane %v198_v34, 2  ;;  %v696_v36 = vrot.slane %v198_v34, 3  ;;  %v200_v48 = vld [vmem:[%s1340_s29 + $0x28] sm:$0xff]  ;;  %p1169_p13 = pneg %p1168_p12 }
  0x1b   : > { %449 = vmatpush.msra.mxu1 %v216_v12  ;;  %783 = vmatpush.msra.mxu3 %v1085_v13  ;;  %v515_v18 = vrot.slane %v195_v16, 2  ;;  %v691_v20 = vrot.slane %v195_v16, 3  ;;  %v245_v22 = vrot.slane %v195_v16, 1  ;;  %v519_v31 = vsel %vm514_vm1, %v516_v19, %v518_v28  ;;  %v199_v41 = vld [vmem:[%s1340_s29 + $0x20] sm:$0xff]  ;;  %v201_v55 = vld [vmem:[%s1340_s29 + $0x30] sm:$0xff]  ;;  %v202_v62 = vld [vmem:[%s1340_s29 + $0x38] sm:$0xff] }
  0x1c   : > { %338 = vmatpush.msra.mxu0 %v1020_v14  ;;  %v695_v32 = vsel %vm690_vm2, %v692_v21, %v694_v29  ;;  %v249_v33 = vsel %vm244_vm3, %v246_v23, %v248_v30  ;;  %v250_v37 = vrot.slane %v198_v34, 1  ;;  %v521_v38 = vsel %vm514_vm1, %v518_v28, %v520_v35  ;;  %v203_v5 = vld [vmem:[%s1340_s29 + $0x40] sm:$0xff]  ;;  %v204_v12 = vld [vmem:[%s1340_s29 + $0x48] sm:$0xff]  ;;  %p1174_p3 = pnand %p1173_p2, %p1169_p13 }
  0x1d   : > { %450 = vmatpush.msra.mxu1 %v215_v15  ;;  %v517_v25 = vsel %vm514_vm1, %v515_v18, %v516_v19  ;;  %v693_v26 = vsel %vm690_vm2, %v691_v20, %v692_v21  ;;  %v247_v27 = vsel %vm244_vm3, %v245_v22, %v246_v23  ;;  %v697_v39 = vsel %vm690_vm2, %v694_v29, %v696_v36  ;;  %v205_v19 = vld [vmem:[%s1340_s29 + $0x50] sm:$0xff] }
  0x1e   : > { %1043 = vmatmul.msk.f32.vlgmr.msra.gmra.mxu1 %vm284_vm0, %v195_v16  ;;  %1066 = vmatmul.msk.f32.vlgmr.msra.gmra.mxu2 %vm284_vm0, %v517_v25  ;;  %v251_v40 = vsel %vm244_vm3, %v248_v30, %v250_v37  ;;  %v522_v42 = vrot.slane %v199_v41, 2  ;;  %v698_v43 = vrot.slane %v199_v41, 3  ;;  %v252_v44 = vrot.slane %v199_v41, 1 }
  0x1f   : > { %1089 = vmatmul.msk.f32.vlgmr.msra.gmra.mxu3 %vm284_vm0, %v693_v26  ;;  %1024 = vmatmul.msk.f32.vlgmr.msra.gmra.mxu0 %vm284_vm0, %v247_v27  ;;  %v524_v49 = vrot.slane %v200_v48, 2  ;;  %v700_v50 = vrot.slane %v200_v48, 3  ;;  %v254_v51 = vrot.slane %v200_v48, 1  ;;  %v526_v56 = vrot.slane %v201_v55, 2  ;;  %v206_v26 = vld [vmem:[%s1340_s29 + $0x58] sm:$0xff] }
  0x20   : > { %v523_v45 = vsel %vm514_vm1, %v520_v35, %v522_v42  ;;  %v699_v46 = vsel %vm690_vm2, %v696_v36, %v698_v43  ;;  %v253_v47 = vsel %vm244_vm3, %v250_v37, %v252_v44  ;;  %v702_v57 = vrot.slane %v201_v55, 3 }
  0x21   : > { %v525_v52 = vsel %vm514_vm1, %v522_v42, %v524_v49  ;;  %v701_v53 = vsel %vm690_vm2, %v698_v43, %v700_v50  ;;  %v255_v54 = vsel %vm244_vm3, %v252_v44, %v254_v51  ;;  %v256_v58 = vrot.slane %v201_v55, 1 }
  0x22   : > { %v527_v59 = vsel %vm514_vm1, %v524_v49, %v526_v56  ;;  %v703_v60 = vsel %vm690_vm2, %v700_v50, %v702_v57  ;;  %v528_v63 = vrot.slane %v202_v62, 2  ;;  %v704_v0 = vrot.slane %v202_v62, 3 }
  0x23   : > { %v257_v61 = vsel %vm244_vm3, %v254_v51, %v256_v58  ;;  %v258_v1 = vrot.slane %v202_v62, 1  ;;  %v530_v6 = vrot.slane %v203_v5, 2  ;;  %v706_v7 = vrot.slane %v203_v5, 3 }
  0x24   : > { %v529_v2 = vsel %vm514_vm1, %v526_v56, %v528_v63  ;;  %v705_v3 = vsel %vm690_vm2, %v702_v57, %v704_v0  ;;  %v260_v8 = vrot.slane %v203_v5, 1  ;;  %v532_v13 = vrot.slane %v204_v12, 2 }
  0x25   : > { %v259_v4 = vsel %vm244_vm3, %v256_v58, %v258_v1  ;;  %v531_v9 = vsel %vm514_vm1, %v528_v63, %v530_v6  ;;  %v707_v10 = vsel %vm690_vm2, %v704_v0, %v706_v7  ;;  %v708_v14 = vrot.slane %v204_v12, 3 }
  0x26   : > { %1044 = vmatmul.msk.f32.gmra.mxu1 %vm284_vm0, %v196_v17  ;;  %1067 = vmatmul.msk.f32.gmra.mxu2 %vm284_vm0, %v519_v31  ;;  %v261_v11 = vsel %vm244_vm3, %v258_v1, %v260_v8  ;;  %v262_v15 = vrot.slane %v204_v12, 1  ;;  %v533_v16 = vsel %vm514_vm1, %v530_v6, %v532_v13  ;;  %v534_v20 = vrot.slane %v205_v19, 2 }
  0x27   : > { %1090 = vmatmul.msk.f32.gmra.mxu3 %vm284_vm0, %v695_v32  ;;  %1025 = vmatmul.msk.f32.gmra.mxu0 %vm284_vm0, %v249_v33  ;;  %v709_v17 = vsel %vm690_vm2, %v706_v7, %v708_v14  ;;  %v710_v21 = vrot.slane %v205_v19, 3  ;;  %v264_v22 = vrot.slane %v205_v19, 1  ;;  %v536_v27 = vrot.slane %v206_v26, 2  ;;  %v207_v33 = vld [vmem:[%s1340_s29 + $0x60] sm:$0xff] }
  0x28   : > { %v263_v18 = vsel %vm244_vm3, %v260_v8, %v262_v15  ;;  %v535_v23 = vsel %vm514_vm1, %v532_v13, %v534_v20  ;;  %v712_v28 = vrot.slane %v206_v26, 3  ;;  %v266_v29 = vrot.slane %v206_v26, 1  ;;  %v213_v13 = vld [vmem:[%s1340_s29 + $0x90] sm:$0xff] }
  0x29   : > { %v265_v25 = vsel %vm244_vm3, %v262_v15, %v264_v22  ;;  %v537_v30 = vsel %vm514_vm1, %v534_v20, %v536_v27  ;;  %v714_v35 = vrot.slane %v207_v33, 3  ;;  %v268_v36 = vrot.slane %v207_v33, 1 }
  0x2a   : > { %v713_v31 = vsel %vm690_vm2, %v710_v21, %v712_v28  ;;  %v267_v32 = vsel %vm244_vm3, %v264_v22, %v266_v29  ;;  %v550_v15 = vrot.slane %v213_v13, 2 }
  0x2e   : > { %1045 = vmatmul.msk.f32.gmra.mxu1 %vm284_vm0, %v197_v24  ;;  %1068 = vmatmul.msk.f32.gmra.mxu2 %vm284_vm0, %v521_v38  ;;  %v711_v24 = vsel %vm690_vm2, %v708_v14, %v710_v21  ;;  %v715_v38 = vsel %vm690_vm2, %v712_v28, %v714_v35 }
  0x2f   : > { %1091 = vmatmul.msk.f32.gmra.mxu3 %vm284_vm0, %v697_v39  ;;  %1026 = vmatmul.msk.f32.gmra.mxu0 %vm284_vm0, %v251_v40  ;;  %v269_v39 = vsel %vm244_vm3, %v266_v29, %v268_v36  ;;  %v208_v40 = vld [vmem:[%s1340_s29 + $0x68] sm:$0xff] }
  0x30   : > { %v716_v42 = vrot.slane %v208_v40, 3  ;;  %v270_v43 = vrot.slane %v208_v40, 1 }
  0x36   : > { %1046 = vmatmul.msk.f32.gmra.mxu1 %vm284_vm0, %v198_v34  ;;  %1069 = vmatmul.msk.f32.gmra.mxu2 %vm284_vm0, %v523_v45  ;;  %v538_v34 = vrot.slane %v207_v33, 2  ;;  %v717_v45 = vsel %vm690_vm2, %v714_v35, %v716_v42 }
  0x37   : > { %1092 = vmatmul.msk.f32.gmra.mxu3 %vm284_vm0, %v699_v46  ;;  %1027 = vmatmul.msk.f32.gmra.mxu0 %vm284_vm0, %v253_v47  ;;  %v271_v46 = vsel %vm244_vm3, %v268_v36, %v270_v43  ;;  %v209_v47 = vld [vmem:[%s1340_s29 + $0x70] sm:$0xff] }
  0x38   : > { %v539_v37 = vsel %vm514_vm1, %v536_v27, %v538_v34  ;;  %v718_v49 = vrot.slane %v209_v47, 3  ;;  %v272_v50 = vrot.slane %v209_v47, 1  ;;  %v214_v27 = vld [vmem:[%s1340_s29 + $0x98] sm:$0xff] }
  0x39   : > { %v552_v29 = vrot.slane %v214_v27, 2 }
  0x3b   : > { %v553_v36 = vsel %vm514_vm1, %v550_v15, %v552_v29 }
  0x3e   : > { %1047 = vmatmul.msk.f32.gmra.mxu1 %vm284_vm0, %v199_v41  ;;  %1070 = vmatmul.msk.f32.gmra.mxu2 %vm284_vm0, %v525_v52  ;;  %v540_v41 = vrot.slane %v208_v40, 2  ;;  %v719_v52 = vsel %vm690_vm2, %v716_v42, %v718_v49 }
  0x3f   : > { %1093 = vmatmul.msk.f32.gmra.mxu3 %vm284_vm0, %v701_v53  ;;  %1028 = vmatmul.msk.f32.gmra.mxu0 %vm284_vm0, %v255_v54  ;;  %v273_v53 = vsel %vm244_vm3, %v270_v43, %v272_v50  ;;  %v210_v54 = vld [vmem:[%s1340_s29 + $0x78] sm:$0xff] }
  0x40   : > { %v541_v44 = vsel %vm514_vm1, %v538_v34, %v540_v41  ;;  %v720_v56 = vrot.slane %v210_v54, 3  ;;  %v274_v57 = vrot.slane %v210_v54, 1 }
  0x46   : > { %1048 = vmatmul.msk.f32.gmra.mxu1 %vm284_vm0, %v200_v48  ;;  %1071 = vmatmul.msk.f32.gmra.mxu2 %vm284_vm0, %v527_v59  ;;  %v542_v48 = vrot.slane %v209_v47, 2  ;;  %v721_v59 = vsel %vm690_vm2, %v718_v49, %v720_v56 }
  0x47   : > { %1094 = vmatmul.msk.f32.gmra.mxu3 %vm284_vm0, %v703_v60  ;;  %1029 = vmatmul.msk.f32.gmra.mxu0 %vm284_vm0, %v257_v61  ;;  %v275_v60 = vsel %vm244_vm3, %v272_v50, %v274_v57  ;;  %v211_v61 = vld [vmem:[%s1340_s29 + $0x80] sm:$0xff] }
  0x48   : > { %v543_v51 = vsel %vm514_vm1, %v540_v41, %v542_v48  ;;  %v722_v63 = vrot.slane %v211_v61, 3  ;;  %v276_v0 = vrot.slane %v211_v61, 1 }
  0x4e   : > { %1049 = vmatmul.msk.f32.gmra.mxu1 %vm284_vm0, %v201_v55  ;;  %1072 = vmatmul.msk.f32.gmra.mxu2 %vm284_vm0, %v529_v2  ;;  %v544_v55 = vrot.slane %v210_v54, 2  ;;  %v723_v2 = vsel %vm690_vm2, %v720_v56, %v722_v63  ;;  %v861_v56 = vld [vmem:[%s1633_s3] sm:$0xff] }
  0x4f   : > { %1095 = vmatmul.msk.f32.gmra.mxu3 %vm284_vm0, %v705_v3  ;;  %1030 = vmatmul.msk.f32.gmra.mxu0 %vm284_vm0, %v259_v4  ;;  %v277_v3 = vsel %vm244_vm3, %v274_v57, %v276_v0  ;;  %v212_v4 = vld [vmem:[%s1340_s29 + $0x88] sm:$0xff] }
  0x50   : > { %v545_v58 = vsel %vm514_vm1, %v542_v48, %v544_v55  ;;  %v724_v6 = vrot.slane %v212_v4, 3  ;;  %v278_v7 = vrot.slane %v212_v4, 1 }
  0x56   : > { %1050 = vmatmul.msk.f32.gmra.mxu1 %vm284_vm0, %v202_v62  ;;  %1073 = vmatmul.msk.f32.gmra.mxu2 %vm284_vm0, %v531_v9  ;;  %v546_v62 = vrot.slane %v211_v61, 2 }
  0x57   : > { %1096 = vmatmul.msk.f32.gmra.mxu3 %vm284_vm0, %v707_v10  ;;  %1031 = vmatmul.msk.f32.gmra.mxu0 %vm284_vm0, %v261_v11  ;;  %v725_v10 = vsel %vm690_vm2, %v722_v63, %v724_v6 }
  0x58   : > { %v547_v1 = vsel %vm514_vm1, %v544_v55, %v546_v62 }
  0x5e   : > { %1051 = vmatmul.msk.f32.gmra.mxu1 %vm284_vm0, %v203_v5  ;;  %1074 = vmatmul.msk.f32.gmra.mxu2 %vm284_vm0, %v533_v16  ;;  %v548_v5 = vrot.slane %v212_v4, 2  ;;  %v726_v16 = vrot.slane %v213_v13, 3 }
  0x5f   : > { %1097 = vmatmul.msk.f32.gmra.mxu3 %vm284_vm0, %v709_v17  ;;  %1032 = vmatmul.msk.f32.gmra.mxu0 %vm284_vm0, %v263_v18  ;;  %v280_v17 = vrot.slane %v213_v13, 1 }
  0x60   : > { %v549_v9 = vsel %vm514_vm1, %v546_v62, %v548_v5  ;;  %v551_v22 = vsel %vm514_vm1, %v548_v5, %v550_v15  ;;  %v862_v5 = vld [vmem:[%s1633_s3 + $0x8] sm:$0xff] }
  0x66   : > { %1052 = vmatmul.msk.f32.gmra.mxu1 %vm284_vm0, %v204_v12  ;;  %1075 = vmatmul.msk.f32.gmra.mxu2 %vm284_vm0, %v535_v23  ;;  %v279_v12 = vsel %vm244_vm3, %v276_v0, %v278_v7  ;;  %v727_v23 = vsel %vm690_vm2, %v724_v6, %v726_v16 }
  0x67   : > { %1098 = vmatmul.msk.f32.gmra.mxu3 %vm284_vm0, %v711_v24  ;;  %1033 = vmatmul.msk.f32.gmra.mxu0 %vm284_vm0, %v265_v25 }
  0x6e   : > { %1053 = vmatmul.msk.f32.gmra.mxu1 %vm284_vm0, %v205_v19  ;;  %1076 = vmatmul.msk.f32.gmra.mxu2 %vm284_vm0, %v537_v30  ;;  %v728_v30 = vrot.slane %v214_v27, 3 }
  0x6f   : > { %1099 = vmatmul.msk.f32.gmra.mxu3 %vm284_vm0, %v713_v31  ;;  %1034 = vmatmul.msk.f32.gmra.mxu0 %vm284_vm0, %v267_v32  ;;  %v282_v31 = vrot.slane %v214_v27, 1 }
  0x76   : > { %1054 = vmatmul.msk.f32.gmra.mxu1 %vm284_vm0, %v206_v26  ;;  %1077 = vmatmul.msk.f32.gmra.mxu2 %vm284_vm0, %v539_v37  ;;  %v281_v26 = vsel %vm244_vm3, %v278_v7, %v280_v17  ;;  %v729_v37 = vsel %vm690_vm2, %v726_v16, %v728_v30 }
  0x77   : > { %1100 = vmatmul.msk.f32.gmra.mxu3 %vm284_vm0, %v715_v38  ;;  %1035 = vmatmul.msk.f32.gmra.mxu0 %vm284_vm0, %v269_v39 }
  0x7e   : > { %1055 = vmatmul.msk.f32.gmra.mxu1 %vm284_vm0, %v207_v33  ;;  %1078 = vmatmul.msk.f32.gmra.mxu2 %vm284_vm0, %v541_v44 }
  0x7f   : > { %1101 = vmatmul.msk.f32.gmra.mxu3 %vm284_vm0, %v717_v45  ;;  %1036 = vmatmul.msk.f32.gmra.mxu0 %vm284_vm0, %v271_v46 }
  0x86   : > { %1056 = vmatmul.msk.f32.gmra.mxu1 %vm284_vm0, %v208_v40  ;;  %1079 = vmatmul.msk.f32.gmra.mxu2 %vm284_vm0, %v543_v51  ;;  %v283_v40 = vsel %vm244_vm3, %v280_v17, %v282_v31 }
  0x87   : > { %1102 = vmatmul.msk.f32.gmra.mxu3 %vm284_vm0, %v719_v52  ;;  %1037 = vmatmul.msk.f32.gmra.mxu0 %vm284_vm0, %v273_v53 }
  0x8e   : > { %1057 = vmatmul.msk.f32.gmra.mxu1 %vm284_vm0, %v209_v47  ;;  %1080 = vmatmul.msk.f32.gmra.mxu2 %vm284_vm0, %v545_v58 }
  0x8f   : > { %1103 = vmatmul.msk.f32.gmra.mxu3 %vm284_vm0, %v721_v59  ;;  %1038 = vmatmul.msk.f32.gmra.mxu0 %vm284_vm0, %v275_v60 }
  0x96   : > { %1058 = vmatmul.msk.f32.gmra.mxu1 %vm284_vm0, %v210_v54  ;;  %1081 = vmatmul.msk.f32.gmra.mxu2 %vm284_vm0, %v547_v1 }
  0x97   : > { %1104 = vmatmul.msk.f32.gmra.mxu3 %vm284_vm0, %v723_v2  ;;  %1039 = vmatmul.msk.f32.gmra.mxu0 %vm284_vm0, %v277_v3 }
  0x9b   : > { %v452_v8 = vpop.f32.mrf.mxu1 }
  0x9c   : > { %v340_v11 = vpop.f32.mrf.mxu0 }
  0x9d   : > { %v453_v14 = vadd.f32 %v452_v8, %v340_v11  ;;  %v866_v11 = vld [vmem:[%s1633_s3 + $0x28] sm:$0xff] }
  0x9e   : > { %1059 = vmatmul.msk.f32.gmra.mxu1 %vm284_vm0, %v211_v61  ;;  %1082 = vmatmul.msk.f32.gmra.mxu2 %vm284_vm0, %v549_v9  ;;  %v865_v61 = vld [vmem:[%s1633_s3 + $0x20] sm:$0xff] }
  0x9f   : > { %1105 = vmatmul.msk.f32.gmra.mxu3 %vm284_vm0, %v725_v10  ;;  %1040 = vmatmul.msk.f32.gmra.mxu0 %vm284_vm0, %v279_v12 }
  0xa1   : > { %v609_v18 = vpop.f32.mrf.mxu2 }
  0xa2   : > { %v785_v19 = vpop.f32.mrf.mxu3  ;;  %v666_v20 = vadd.f32 %v609_v18, %v453_v14 }
  0xa3   : > { %v455_v21 = vpop.f32.mrf.mxu1 }
  0xa4   : > { %v842_v24 = vadd.f32 %v785_v19, %v666_v20  ;;  %v343_v25 = vpop.f32.mrf.mxu0  ;;  %v863_v19 = vld [vmem:[%s1633_s3 + $0x10] sm:$0xff] }
  0xa5   : > { %v456_v28 = vadd.f32 %v455_v21, %v343_v25  ;;  %v867_v25 = vld [vmem:[%s1633_s3 + $0x30] sm:$0xff] }
  0xa6   : > { %1060 = vmatmul.msk.f32.gmra.mxu1 %vm284_vm0, %v212_v4  ;;  %1083 = vmatmul.msk.f32.gmra.mxu2 %vm284_vm0, %v551_v22  ;;  %v880_v62 = vadd.f32 %v861_v56, %v842_v24 }
  0xa7   : > { %1106 = vmatmul.msk.f32.gmra.mxu3 %vm284_vm0, %v727_v23  ;;  %1041 = vmatmul.msk.f32.gmra.mxu0 %vm284_vm0, %v281_v26 }
  0xa8   : > { %v900_v3 = vsel %vm899_vm4, %v880_v62, -inf }
  0xa9   : > { %v612_v32 = vpop.f32.mrf.mxu2 }
  0xaa   : > { %v788_v33 = vpop.f32.mrf.mxu3  ;;  %v667_v34 = vadd.f32 %v612_v32, %v456_v28 }
  0xab   : > { %v458_v35 = vpop.f32.mrf.mxu1 }
  0xac   : > { %v843_v38 = vadd.f32 %v788_v33, %v667_v34  ;;  %v346_v39 = vpop.f32.mrf.mxu0  ;;  %v864_v33 = vld [vmem:[%s1633_s3 + $0x18] sm:$0xff] }
  0xad   : > { %v459_v41 = vadd.f32 %v458_v35, %v346_v39  ;;  %v868_v39 = vld [vmem:[%s1633_s3 + $0x38] sm:$0xff] }
  0xae   : > { %1061 = vmatmul.msk.f32.gmra.mxu1 %vm284_vm0, %v213_v13  ;;  %1084 = vmatmul.msk.f32.gmra.mxu2 %vm284_vm0, %v553_v36  ;;  %v881_v12 = vadd.f32 %v862_v5, %v843_v38 }
  0xaf   : > { %1107 = vmatmul.msk.f32.gmra.mxu3 %vm284_vm0, %v729_v37  ;;  %1042 = vmatmul.msk.f32.gmra.mxu0 %vm284_vm0, %v283_v40 }
  0xb0   : > { %v901_v17 = vsel %vm899_vm4, %v881_v12, -inf }
  0xb1   : > { %v615_v42 = vpop.f32.mrf.mxu2 }
  0xb2   : > { %v791_v43 = vpop.f32.mrf.mxu3  ;;  %v668_v44 = vadd.f32 %v615_v42, %v459_v41 }
  0xb3   : > { %v461_v45 = vpop.f32.mrf.mxu1 }
  0xb4   : > { %v844_v46 = vadd.f32 %v791_v43, %v668_v44  ;;  %v349_v47 = vpop.f32.mrf.mxu0 }
  0xb5   : > { %v462_v48 = vadd.f32 %v461_v45, %v349_v47 }
  0xb6   : > { %v882_v26 = vadd.f32 %v863_v19, %v844_v46 }
  0xb8   : > { %v1518_v31 = vsel %vm899_vm4, %v882_v26, -inf }
  0xb9   : > { %v618_v49 = vpop.f32.mrf.mxu2 }
  0xba   : > { %v794_v50 = vpop.f32.mrf.mxu3  ;;  %v669_v51 = vadd.f32 %v618_v49, %v462_v48 }
  0xbb   : > { %v464_v52 = vpop.f32.mrf.mxu1 }
  0xbc   : > { %v845_v53 = vadd.f32 %v794_v50, %v669_v51  ;;  %v352_v54 = vpop.f32.mrf.mxu0 }
  0xbd   : > { %v465_v55 = vadd.f32 %v464_v52, %v352_v54  ;;  %v869_v52 = vld [vmem:[%s1633_s3 + $0x40] sm:$0xff] }
  0xbe   : > { %v883_v40 = vadd.f32 %v864_v33, %v845_v53 }
  0xc0   : > { %v1532_v45 = vsel %vm899_vm4, %v883_v40, -inf }
  0xc1   : > { %v621_v57 = vpop.f32.mrf.mxu2 }
  0xc2   : > { %v797_v58 = vpop.f32.mrf.mxu3  ;;  %v670_v59 = vadd.f32 %v621_v57, %v465_v55 }
  0xc3   : > { %v467_v60 = vpop.f32.mrf.mxu1 }
  0xc4   : > { %v846_v63 = vadd.f32 %v797_v58, %v670_v59  ;;  %v355_v0 = vpop.f32.mrf.mxu0 }
  0xc5   : > { %v468_v1 = vadd.f32 %v467_v60, %v355_v0 }
  0xc6   : > { %v884_v2 = vadd.f32 %v865_v61, %v846_v63  ;;  %v870_v63 = vld [vmem:[%s1633_s3 + $0x48] sm:$0xff] }
  0xc8   : > { %v904_v4 = vsel %vm899_vm4, %v884_v2, -inf }
  0xc9   : > { %v905_v6 = vmax.f32 %v900_v3, %v904_v4  ;;  %v624_v7 = vpop.f32.mrf.mxu2 }
  0xca   : > { %v800_v8 = vpop.f32.mrf.mxu3  ;;  %v671_v9 = vadd.f32 %v624_v7, %v468_v1 }
  0xcb   : > { %v470_v10 = vpop.f32.mrf.mxu1 }
  0xcc   : > { %v847_v13 = vadd.f32 %v800_v8, %v671_v9  ;;  %v358_v14 = vpop.f32.mrf.mxu0 }
  0xcd   : > { %v471_v15 = vadd.f32 %v470_v10, %v358_v14 }
  0xce   : > { %v885_v16 = vadd.f32 %v866_v11, %v847_v13 }
  0xd0   : > { %v906_v18 = vsel %vm899_vm4, %v885_v16, -inf }
  0xd1   : > { %v907_v20 = vmax.f32 %v901_v17, %v906_v18  ;;  %v627_v21 = vpop.f32.mrf.mxu2 }
  0xd2   : > { %v803_v22 = vpop.f32.mrf.mxu3  ;;  %v672_v23 = vadd.f32 %v627_v21, %v471_v15 }
  0xd3   : > { %v473_v24 = vpop.f32.mrf.mxu1 }
  0xd4   : > { %v848_v27 = vadd.f32 %v803_v22, %v672_v23  ;;  %v361_v28 = vpop.f32.mrf.mxu0 }
  0xd5   : > { %v474_v29 = vadd.f32 %v473_v24, %v361_v28 }
  0xd6   : > { %v886_v30 = vadd.f32 %v867_v25, %v848_v27 }
  0xd8   : > { %v1521_v32 = vsel %vm899_vm4, %v886_v30, -inf }
  0xd9   : > { %v909_v34 = vmax.f32 %v1518_v31, %v1521_v32  ;;  %v630_v35 = vpop.f32.mrf.mxu2 }
  0xda   : > { %v806_v36 = vpop.f32.mrf.mxu3  ;;  %v673_v37 = vadd.f32 %v630_v35, %v474_v29 }
  0xdb   : > { %v476_v38 = vpop.f32.mrf.mxu1 }
  0xdc   : > { %v849_v41 = vadd.f32 %v806_v36, %v673_v37  ;;  %v364_v42 = vpop.f32.mrf.mxu0 }
  0xdd   : > { %v477_v43 = vadd.f32 %v476_v38, %v364_v42 }
  0xde   : > { %v887_v44 = vadd.f32 %v868_v39, %v849_v41 }
  0xe0   : > { %v1535_v46 = vsel %vm899_vm4, %v887_v44, -inf }
  0xe1   : > { %v911_v47 = vmax.f32 %v1532_v45, %v1535_v46  ;;  %v633_v48 = vpop.f32.mrf.mxu2  ;;  %v943_v45 = vld [vmem:[%s1632_s2] sm:$0x1] }
  0xe2   : > { %v809_v49 = vpop.f32.mrf.mxu3  ;;  %v674_v50 = vadd.f32 %v633_v48, %v477_v43 }
  0xe3   : > { %v479_v51 = vpop.f32.mrf.mxu1 }
  0xe4   : > { %v850_v53 = vadd.f32 %v809_v49, %v674_v50  ;;  %v367_v54 = vpop.f32.mrf.mxu0 }
  0xe5   : > { %v480_v55 = vadd.f32 %v479_v51, %v367_v54  ;;  %v873_v51 = vld [vmem:[%s1633_s3 + $0x60] sm:$0xff] }
  0xe6   : > { %v888_v56 = vadd.f32 %v869_v52, %v850_v53  ;;  %v874_v52 = vld [vmem:[%s1633_s3 + $0x68] sm:$0xff] }
  0xe8   : > { %v912_v57 = vsel %vm899_vm4, %v888_v56, -inf }
  0xe9   : > { %v1543_v58 = vmax.f32 %v905_v6, %v912_v57  ;;  %v636_v59 = vpop.f32.mrf.mxu2  ;;  %v877_v57 = vld [vmem:[%s1633_s3 + $0x80] sm:$0xff] }
  0xea   : > { %v812_v60 = vpop.f32.mrf.mxu3  ;;  %v675_v61 = vadd.f32 %v636_v59, %v480_v55 }
  0xeb   : > { %v482_v62 = vpop.f32.mrf.mxu1 }
  0xec   : > { %v851_v0 = vadd.f32 %v812_v60, %v675_v61  ;;  %v370_v1 = vpop.f32.mrf.mxu0 }
  0xed   : > { %v483_v37 = vadd.f32 %v482_v62, %v370_v1  ;;  %v871_v1 = vld [vmem:[%s1633_s3 + $0x50] sm:$0xff] }
  0xee   : > { %v889_v2 = vadd.f32 %v870_v63, %v851_v0 }
  0xf0   : > { %v914_v3 = vsel %vm899_vm4, %v889_v2, -inf }
  0xf1   : > { %v1549_v4 = vmax.f32 %v907_v20, %v914_v3  ;;  %v639_v5 = vpop.f32.mrf.mxu2 }
  0xf2   : > { %v815_v7 = vpop.f32.mrf.mxu3  ;;  %v676_v50 = vadd.f32 %v639_v5, %v483_v37 }
  0xf3   : > { %v485_v8 = vpop.f32.mrf.mxu1 }
  0xf4   : > { %v373_v6 = vpop.f32.mrf.mxu0  ;;  %v852_v62 = vadd.f32 %v815_v7, %v676_v50 }
  0xf5   : > { %v486_v42 = vadd.f32 %v485_v8, %v373_v6  ;;  %v878_v6 = vld [vmem:[%s1633_s3 + $0x88] sm:$0xff] }
  0xf9   : > { %v642_v9 = vpop.f32.mrf.mxu2 }
  0xfa   : > { %v818_v10 = vpop.f32.mrf.mxu3  ;;  %v677_v56 = vadd.f32 %v642_v9, %v486_v42 }
  0xfb   : > { %v488_v11 = vpop.f32.mrf.mxu1 }
  0xfc   : > { %v376_v12 = vpop.f32.mrf.mxu0  ;;  %v853_v8 = vadd.f32 %v818_v10, %v677_v56  ;;  %v875_v10 = vld [vmem:[%s1633_s3 + $0x70] sm:$0xff] }
  0xfd   : > { %v489_v28 = vadd.f32 %v488_v11, %v376_v12 }
 0x101   : > { %v645_v13 = vpop.f32.mrf.mxu2 }
 0x102   : > { %v821_v14 = vpop.f32.mrf.mxu3  ;;  %v678_v35 = vadd.f32 %v645_v13, %v489_v28 }
 0x103   : > { %v491_v15 = vpop.f32.mrf.mxu1 }
 0x104   : > { %v379_v16 = vpop.f32.mrf.mxu0  ;;  %v854_v43 = vadd.f32 %v821_v14, %v678_v35 }
 0x105   : > { %v492_v29 = vadd.f32 %v491_v15, %v379_v16  ;;  %v890_v15 = vadd.f32 %v871_v1, %v852_v62  ;;  %v872_v16 = vld [vmem:[%s1633_s3 + $0x58] sm:$0xff] }
 0x106   : > { %v892_v59 = vadd.f32 %v873_v51, %v854_v43 }
 0x108   : > { %v920_v11 = vsel %vm899_vm4, %v892_v59, -inf }
 0x109   : > { %v648_v17 = vpop.f32.mrf.mxu2 }
 0x10a   : > { %v824_v18 = vpop.f32.mrf.mxu3  ;;  %v679_v36 = vadd.f32 %v648_v17, %v492_v29 }
 0x10b   : > { %v494_v19 = vpop.f32.mrf.mxu1 }
 0x10c   : > { %v382_v21 = vpop.f32.mrf.mxu0  ;;  %v855_v44 = vadd.f32 %v824_v18, %v679_v36 }
 0x10d   : > { %v495_v48 = vadd.f32 %v494_v19, %v382_v21 }
 0x10e   : > { %v893_v60 = vadd.f32 %v874_v52, %v855_v44 }
 0x110   : > { %v922_v12 = vsel %vm899_vm4, %v893_v60, -inf }
 0x111   : > { %v651_v22 = vpop.f32.mrf.mxu2 }
 0x112   : > { %v827_v23 = vpop.f32.mrf.mxu3  ;;  %v680_v61 = vadd.f32 %v651_v22, %v495_v48  ;;  %v921_v22 = vmax.f32 %v1543_v58, %v920_v11  ;;  %v879_v58 = vld [vmem:[%s1633_s3 + $0x90] sm:$0xff] }
 0x113   : > { %v497_v20 = vpop.f32.mrf.mxu1 }
 0x114   : > { %v385_v24 = vpop.f32.mrf.mxu0  ;;  %v856_v7 = vadd.f32 %v827_v23, %v680_v61  ;;  %v923_v23 = vmax.f32 %v1549_v4, %v922_v12 }
 0x115   : > { %v498_v53 = vadd.f32 %v497_v20, %v385_v24  ;;  %v876_v20 = vld [vmem:[%s1633_s3 + $0x78] sm:$0xff]  ;;  %v891_v24 = vadd.f32 %v872_v16, %v853_v8 }
 0x117   : > { %v918_v4 = vsel %vm899_vm4, %v891_v24, -inf }
 0x118   : > { %v919_v43 = vmax.f32 %v911_v47, %v918_v4 }
 0x119   : > { %v654_v25 = vpop.f32.mrf.mxu2 }
 0x11a   : > { %v830_v26 = vpop.f32.mrf.mxu3  ;;  %v681_v2 = vadd.f32 %v654_v25, %v498_v53  ;;  %v894_v25 = vadd.f32 %v875_v10, %v856_v7 }
 0x11b   : > { %v500_v27 = vpop.f32.mrf.mxu1 }
 0x11c   : > { %v388_v30 = vpop.f32.mrf.mxu0  ;;  %v857_v17 = vadd.f32 %v830_v26, %v681_v2 }
 0x11d   : > { %v501_v33 = vadd.f32 %v500_v27, %v388_v30 }
 0x11e   : > { %v895_v35 = vadd.f32 %v876_v20, %v857_v17 }
 0x121   : > { %v657_v38 = vpop.f32.mrf.mxu2 }
 0x122   : > { %v833_v39 = vpop.f32.mrf.mxu3  ;;  %v682_v40 = vadd.f32 %v657_v38, %v501_v33  ;;  %v916_v33 = vsel %vm899_vm4, %v890_v15, -inf  ;;  %v924_v38 = vsel %vm899_vm4, %v894_v25, -inf }
 0x123   : > { %v503_v41 = vpop.f32.mrf.mxu1 }
 0x124   : > { %v391_v49 = vpop.f32.mrf.mxu0  ;;  %v858_v54 = vadd.f32 %v833_v39, %v682_v40  ;;  %v917_v40 = vmax.f32 %v909_v34, %v916_v33 }
 0x125   : > { %v504_v55 = vadd.f32 %v503_v41, %v391_v49  ;;  %v926_v41 = vsel %vm899_vm4, %v895_v35, -inf }
 0x126   : > { %v896_v3 = vadd.f32 %v877_v57, %v858_v54  ;;  %v925_v44 = vmax.f32 %v917_v40, %v924_v38  ;;  %v927_v49 = vmax.f32 %v919_v43, %v926_v41 }
 0x128   : > { %v928_v18 = vsel %vm899_vm4, %v896_v3, -inf }
 0x129   : > { %v660_v63 = vpop.f32.mrf.mxu2  ;;  %v929_v28 = vmax.f32 %v921_v22, %v928_v18 }
 0x12a   : > { %v836_v0 = vpop.f32.mrf.mxu3  ;;  %v683_v5 = vadd.f32 %v660_v63, %v504_v55 }
 0x12b   : > { %v506_v9 = vpop.f32.mrf.mxu1 }
 0x12c   : > { %v859_v13 = vadd.f32 %v836_v0, %v683_v5  ;;  %v394_v14 = vpop.f32.mrf.mxu0 }
 0x12d   : > { %v507_v21 = vadd.f32 %v506_v9, %v394_v14 }
 0x12e   : > { %v897_v19 = vadd.f32 %v878_v6, %v859_v13 }
 0x130   : > { %v930_v27 = vsel %vm899_vm4, %v897_v19, -inf }
 0x131   : > { %v931_v29 = vmax.f32 %v923_v23, %v930_v27  ;;  %v663_v30 = vpop.f32.mrf.mxu2 }
 0x132   : > { %v839_v26 = vpop.f32.mrf.mxu3  ;;  %v684_v36 = vadd.f32 %v663_v30, %v507_v21 }
 0x133   : > { %v934_v37 = vmax.f32 %v929_v28, %v931_v29 }
 0x134   : > { %v860_v39 = vadd.f32 %v839_v26, %v684_v36 }
 0x136   : > { %v898_v42 = vadd.f32 %v879_v58, %v860_v39 }
 0x138   : > { %v932_v48 = vsel %vm899_vm4, %v898_v42, -inf }
 0x139   : > { %v933_v50 = vmax.f32 %v925_v44, %v932_v48 }
 0x13b   : > { %v935_v51 = vmax.f32 %v933_v50, %v927_v49 }
 0x13d   : > { %v936_v52 = vmax.f32 %v934_v37, %v935_v51 }
 0x13f   : > { %v937_v53 = vrot.slane %v936_v52, 4 }
 0x141   : > { %v938_v54 = vmax.f32 %v936_v52, %v937_v53 }
 0x143   : > { %v939_v31 = vrot.slane %v938_v54, 2 }
 0x145   : > { %v940_v32 = vmax.f32 %v938_v54, %v939_v31 }
 0x147   : > { %v941_v34 = vrot.slane %v940_v32, 1 }
 0x149   : > { %v942_v46 = vmax.f32 %v940_v32, %v941_v34 }
 0x14b   : > { %v944_v47 = vadd.f32 %v943_v45, %v942_v46 }
 0x14d   : > { %946 = vst.msk [vmem:[%s189_s14] sm:$0x1] %vm945_vm5, %v944_v47 }
 0x14e   : > { %1177 = shalt.err (!%p1174_p3)
}
 0x14f   : > { %1111 = dma.vmem_to_hbm [thread:$0]  (%p1277_p5), %s959_s20, 16, %s961_s22, %s948_s23  }
 0x150 PF: > { %p1117_p4 = scmp.ge.s32.totalorder %s1212_s18, 2  ;;  %s972_s7 = sand.u32 1, %s1200_s15  }
 0x151   : > { %s973_s8 = scalar_lea.sflag [#allocation3], %s972_s7 }
 0x152   : > { %p1114_p7 = pnand %p1117_p4, %p1281_p6 }
 0x154   : > { %p1115_p8 = pneg %p1114_p7 }
 0x156   : > { %1195 = dma.done.wait (%p1115_p8), %s973_s8, 16  }
 0x157   : > { %1197 = vsyncadd (%p1115_p8), %s973_s8, 4294967280  ;;  %p14_p9 = scmp.ge.s32.totalorder %s1264_s21, 4   ;;  %s1637_s15 = smov %s1204_s16 }
 0x158   : > { %s1638_s16 = smov %s1208_s17  ;;  %s1639_s17 = smov %s1275_s24 }
 0x159   : > { %s1640_s18 = smov %s1264_s21  ;;  %16 = sbr.rel (!%p14_p9) target bundleno = 3 (0x3), region = 74 }
 0x15e   :  { %978 = vsyncpa [#allocation3], 1 }
 0x15f   :  { %980 = vsyncpa [#allocation3 + $0x1], 1 }

</bundles_post_ra>
